<compile_context>
chip_gen: v7x
topology: tpu7x:2x2x1
jax: 0.10.0
libtpu: 0.0.40
codegen_flags: <defaults>
</compile_context>

<pallas_src>
import jax
import jax.numpy as jnp
from jax.experimental import pallas as pl
from jax.experimental.pallas import tpu as pltpu

dim_s = 4
C_IN = (dim_s + 1) * 2   # 10
C_OUT = dim_s * 2        # 8


def _mixer_kernel(w_ref, x_ref, o_ref):
    # w_ref: (C_OUT, C_IN) ; x_ref: (C_IN, TN) ; o_ref: (C_OUT, TN)
    # Columns are independent, so garbage in the padded (OOB) columns of the
    # last partial tile only produces garbage output columns, which Pallas
    # masks out on writeback.
    o_ref[...] = jnp.dot(
        w_ref[...], x_ref[...], preferred_element_type=jnp.float32
    ).astype(o_ref.dtype)


def mixer_forward(x, weight, *, tile_n=32768):
    """x: any array reshapeable to (1, 10, N); weight: (8, 10) Linear weight (no bias)."""
    x_flat = x.reshape(C_IN, -1)            # (10, N)
    n = x_flat.shape[1]

    # Cap the tile at the lane-rounded sequence length so small inputs do not
    # allocate oversized VMEM blocks; keep it a multiple of 128 for lane
    # alignment (BlockSpec last-dim constraint).
    n_rounded = ((n + 127) // 128) * 128
    tile_n = max(128, min(tile_n, n_rounded))

    grid = (pl.cdiv(n, tile_n),)

    itemsize = jnp.dtype(x_flat.dtype).itemsize
    cost = pl.CostEstimate(
        flops=2 * C_OUT * C_IN * n,
        transcendentals=0,
        bytes_accessed=(C_IN + C_OUT) * n * itemsize
        + C_OUT * C_IN * jnp.dtype(weight.dtype).itemsize,
    )

    out = pl.pallas_call(
        _mixer_kernel,
        out_shape=jax.ShapeDtypeStruct((C_OUT, n), x_flat.dtype),
        grid_spec=pltpu.PrefetchScalarGridSpec(
            num_scalar_prefetch=0,
            grid=grid,
            in_specs=[
                pl.BlockSpec((C_OUT, C_IN), lambda i: (0, 0)),   # weight, resident
                pl.BlockSpec((C_IN, tile_n), lambda i: (0, i)),  # input tile
            ],
            out_specs=pl.BlockSpec((C_OUT, tile_n), lambda i: (0, i)),
        ),
        compiler_params=pltpu.CompilerParams(
            dimension_semantics=("parallel",),
        ),
        cost_estimate=cost,
    )(weight, x_flat)

    return out.reshape(dim_s, 2, -1)          # (4, 2, N)


def mixer_forward_ref(x, weight):
    """Pure-JAX reference mirroring the PyTorch forward exactly."""
    xr = x.reshape(1, C_IN, -1)                      # (1, 10, N)
    xt = jnp.swapaxes(xr, -1, -2)                    # (1, N, 10)
    y = xt @ weight.T                                # (1, N, 8)
    y = jnp.swapaxes(y, -1, -2)                      # (1, 8, N)
    return y.reshape(dim_s, 2, -1)


if __name__ == "__main__":
    key = jax.random.PRNGKey(0)
    k_w, k_x, k_x2 = jax.random.split(key, 3)

    # Deterministic synthetic Linear weight: shape (out=8, in=10), no bias.
    weight = jax.random.uniform(
        k_w, (C_OUT, C_IN), dtype=jnp.float32, minval=-0.3, maxval=0.3
    )

    # Input consistent with the forward: (dim_s+1, 2, N) sources stack.
    seq = 512
    x = jax.random.normal(k_x, (dim_s + 1, 2, seq), dtype=jnp.float32)

    out = mixer_forward(x, weight)
    out = jax.block_until_ready(out)

    ref = mixer_forward_ref(x, weight)
    assert out.shape == (dim_s, 2, seq), out.shape
    assert jnp.allclose(out, ref, atol=1e-5, rtol=1e-5), "mismatch vs reference"

    # Also exercise the ragged-tail path: N not a multiple of the tile, so the
    # last block is partial (masked writeback inside Pallas, no host pad/slice).
    seq2 = 300
    x2 = jax.random.normal(k_x2, (dim_s + 1, 2, seq2), dtype=jnp.float32)
    out2 = jax.block_until_ready(mixer_forward(x2, weight, tile_n=256))
    ref2 = mixer_forward_ref(x2, weight)
    assert out2.shape == (dim_s, 2, seq2), out2.shape
    assert jnp.allclose(out2, ref2, atol=1e-5, rtol=1e-5), "mismatch (ragged tail)"

    print("KERNEL_OK")
</pallas_src>

<mosaic_0001>
module attributes {stable_mosaic.version = 11 : i64} {
  func.func @_mixer_kernel(%arg0: i32, %arg1: memref<8x10xf32, #tpu.memory_space<vmem>>, %arg2: memref<10x512xf32, #tpu.memory_space<vmem>>, %arg3: memref<8x512xf32, #tpu.memory_space<vmem>>) attributes {dimension_semantics = [#tpu.dimension_semantics<parallel>], iteration_bounds = array<i64: 1>, scalar_prefetch = 0 : i64, scratch_operands = 0 : i64, tpu.core_type = #tpu.core_type<tc>, window_params = [{pipeline_mode = #tpu.pipeline_mode<synchronous>, transform_indices = @transform_0, window_bounds = array<i64: 8, 10>}, {transform_indices = @transform_1, window_bounds = array<i64: 10, 512>}, {transform_indices = @transform_2, window_bounds = array<i64: 8, 512>}]} {
    %c0 = arith.constant 0 : index
    %c0_0 = arith.constant 0 : index
    %0 = vector.load %arg1[%c0, %c0_0] : memref<8x10xf32, #tpu.memory_space<vmem>>, vector<8x10xf32>
    %c0_1 = arith.constant 0 : index
    %c0_2 = arith.constant 0 : index
    %1 = vector.load %arg2[%c0_1, %c0_2] : memref<10x512xf32, #tpu.memory_space<vmem>>, vector<10x512xf32>
    %cst = arith.constant dense<0.000000e+00> : vector<8x512xf32>
    %2 = tpu.matmul %0, %1, %cst {dimension_numbers = #tpu.dot_dimension_numbers<[1], [0], [0], [1], [0, 0, 1, 1], [], []>} : vector<8x10xf32>, vector<10x512xf32>, vector<8x512xf32> -> vector<8x512xf32>
    %c0_3 = arith.constant 0 : index
    %c0_4 = arith.constant 0 : index
    %3 = vector.load %arg3[%c0_3, %c0_4] : memref<8x512xf32, #tpu.memory_space<vmem>>, vector<8x512xf32>
    tpu.vector_store %arg3[%c0_3, %c0_4], %2 {strides = array<i32>} : memref<8x512xf32, #tpu.memory_space<vmem>>, vector<8x512xf32>,
    return
  }
  func.func @transform_0(%arg0: i32) -> (i32, i32) {
    %c0_i32 = arith.constant 0 : i32
    %c0_i32_0 = arith.constant 0 : i32
    %c0_i32_1 = arith.constant 0 : i32
    return %c0_i32, %c0_i32_0 : i32, i32
  }
  func.func @transform_1(%arg0: i32) -> (i32, i32) {
    %c0_i32 = arith.constant 0 : i32
    %c0_i32_0 = arith.constant 0 : i32
    return %c0_i32, %arg0 : i32, i32
  }
  func.func @transform_2(%arg0: i32) -> (i32, i32) {
    %c0_i32 = arith.constant 0 : i32
    %c0_i32_0 = arith.constant 0 : i32
    return %c0_i32, %arg0 : i32, i32
  }
}

</mosaic_0001>

<bundles_post_ra>
// kernel: tpu_custom_call.1
= control target key start
LH: loop header
LB: loop body
LE: loop exit
PB: predicated region body
PF: predicated region fallthrough
CT: control target
= control target key end

     0   :  { %7 = vsyncpa [#allocation3], 0  ;;  %s400_s0 = inlined_call_operand.hbm [shape: f32[8,10], index: 0, kind: input, shape index: {}]   ;;  %s401_s1 = inlined_call_operand.hbm [shape: f32[10,512], index: 1, kind: input, shape index: {}]   ;;  %s402_s2 = inlined_call_operand.hbm [shape: f32[8,512], index: 2, kind: output, shape index: {}]  }
   0x1   :  { %8 = vsyncpa [#allocation6], 0 }
   0x2   :  { %9 = vsyncpa [#allocation4], 0  ;;  %s323_s9 = smov [#allocation2]   ;;  %s324_s11 = smov [#allocation5]  }
   0x3   :  { %s16_s10 = sshll.u32 %s323_s9, 4  ;;  %s25_s12 = sshll.u32 %s324_s11, 4  ;;  %s17_s10 = int_to_ptr.vmem [resolvable:$true] %s16_s10  ;;  %s345_s12 = int_to_ptr.vmem [resolvable:$true] %s25_s12 }
   0x4   :  { %s251_s15 = scalar_lea.hbm %s400_s0, 128 }
   0x5   :  { %p252_p0 = scmp.ne.s32.totalorder %s400_s0, %s251_s15  ;;  %p255_p1 = scmp.lt.u32.totalorder %s251_s15, %s400_s0 }
   0x7   :  { %p257_p2 = pnand %p255_p1, %p252_p0 }
   0x9   :  { %260 = shalt.err (!%p257_p2)
}
   0xa   :  { %s261_s20 = scalar_lea.vmem %s17_s10, 128  ;;  %p266_p4 = scmp.lt.s32.totalorder %s17_s10, %s17_s10 }
   0xb   :  { %p262_p3 = scmp.ne.s32.totalorder %s17_s10, %s261_s20  ;;  %p267_p5 = scmp.lt.s32.totalorder %s261_s20, %s261_s20 }
   0xd   :  { %p268_p6 = por %p267_p5, %p266_p4 }
   0xf   :  { %p269_p7 = pnand %p268_p6, %p262_p3 }
  0x11   :  { %272 = shalt.err (!%p269_p7)
}
  0x12   :  { %19 = dma.hbm_to_vmem [thread:$0]  %s400_s0, 128, %s17_s10, [#allocation3]  }
  0x13   :  { %s273_s25 = scalar_lea.hbm %s401_s1, 1024 }
  0x14   :  { %p274_p8 = scmp.ne.s32.totalorder %s401_s1, %s273_s25  ;;  %p277_p9 = scmp.lt.u32.totalorder %s273_s25, %s401_s1 }
  0x16   :  { %p279_p10 = pnand %p277_p9, %p274_p8 }
  0x18   :  { %282 = shalt.err (!%p279_p10)
}
  0x19   :  { %s283_s30 = scalar_lea.vmem %s345_s12, 1024  ;;  %p288_p12 = scmp.lt.s32.totalorder %s345_s12, %s345_s12 }
  0x1a   :  { %p284_p11 = scmp.ne.s32.totalorder %s345_s12, %s283_s30  ;;  %p289_p13 = scmp.lt.s32.totalorder %s283_s30, %s283_s30 }
  0x1c   :  { %p290_p0 = por %p289_p13, %p288_p12 }
  0x1e   :  { %p291_p1 = pnand %p290_p0, %p284_p11 }
  0x20   :  { %294 = shalt.err (!%p291_p1)
}
  0x21   :  { %s325_s0 = smov 512   ;;  %s326_s3 = smov 32  }
  0x22   :  { %31 = dma.hbm_to_vmem [thread:$0]  %s401_s1, 1024, %s345_s12, [#allocation6], %s325_s0, %s325_s0, %s326_s3  }
  0x23   :  { %317 = dma.done.wait [#allocation3], 128  }
  0x24   :  { %318 = vsyncadd [#allocation3], 4294967168 }
  0x25   :  { %319 = dma.done.wait [#allocation6], 1024  }
  0x26   :  { %320 = vsyncadd [#allocation6], 4294966272  ;;  %v327_v0 = vmov 0.0   ;;  %vm51_vm0 = vcmask 1041408   ;;  %vm328_vm1 = vmmov 1   ;;  %v40_v2 = vld [vmem:[#allocation5 + $0x8] sm:$0xff] }
  0x27   :  { %128 = vmatprep.mubr.f32.mxu0 %v327_v0  ;;  %199 = vmatprep.mubr.f32.mxu1 %v327_v0  ;;  %vm376_vm2 = vmpackc.low %vm51_vm0, %vm328_vm1  ;;  %v44_v3 = vld [vmem:[#allocation5 + $0x28] sm:$0x3]  ;;  %v42_v4 = vld [vmem:[#allocation5 + $0x18] sm:$0xff]  ;;  %vm47_vm3 = vcmask 80896   ;;  %s329_s1 = smov [#allocation7]  }
  0x28   :  { %v232_v5 = vpack.c.bf16 %v44_v3, %v40_v2  ;;  %v46_v6 = vld [vmem:[#allocation5 + $0x38] sm:$0x3]  ;;  %v39_v7 = vld [vmem:[#allocation5] sm:$0xff]  ;;  %v41_v11 = vld [vmem:[#allocation5 + $0x10] sm:$0xff]  ;;  %s216_s6 = sshll.u32 %s329_s1, 4  ;;  %s217_s6 = int_to_ptr.vmem [resolvable:$true] %s216_s6 }
  0x29   :  { %v43_v8 = vld [vmem:[#allocation5 + $0x20] sm:$0x3]  ;;  %v238_v9 = vpack.c.bf16 %v46_v6, %v42_v4  ;;  %v45_v12 = vld [vmem:[#allocation5 + $0x30] sm:$0x3]  ;;  %v38_v14 = vld [vmem:[#allocation2] sm:$0xff]  ;;  %s295_s7 = scalar_lea.vmem %s217_s6, 512  ;;  %p300_p3 = scmp.lt.s32.totalorder %s217_s6, %s217_s6 }
  0x2a   :  { %v235_v10 = vpack.c.bf16 %v43_v8, %v39_v7  ;;  %234 = vmatprep.subr.msk.bf16.mxu0 %vm376_vm2, %v232_v5  ;;  %v241_v13 = vpack.c.bf16 %v45_v12, %v41_v11  ;;  %p296_p2 = scmp.ne.s32.totalorder %s217_s6, %s295_s7  ;;  %p301_p4 = scmp.lt.s32.totalorder %s295_s7, %s295_s7 }
  0x2b   :  { %240 = vmatprep.subr.msk.bf16.mxu1 %vm376_vm2, %v238_v9 }
  0x2c   :  { %237 = vmatpush1.bf16.msk.msra.mxu0 %vm376_vm2, %v235_v10  ;;  %243 = vmatpush1.bf16.msk.msra.mxu1 %vm376_vm2, %v241_v13  ;;  %p302_p5 = por %p301_p4, %p300_p3 }
  0x2e   :  { %p303_p6 = pnand %p302_p5, %p296_p2 }
  0x2f   :  { %228 = vmatmul.mubr.msk.f32.vlgmr.msra.gmra.mrb[0].mxu0 %vm47_vm3, %v38_v14  ;;  %231 = vmatmul.mubr.msk.f32.vlgmr.msra.gmra.mrb[0].mxu1 %vm47_vm3, %v38_v14 }
 0x102   :  { %v130_v15 = vpop.f32.mrb[0].mxu0  ;;  %v201_v16 = vpop.f32.mrb[0].mxu1 }
 0x103   :  { %206 = vst [vmem:[#allocation7] sm:$0xff] %v130_v15  ;;  %v132_v17 = vpop.f32.mrb[1].mxu0  ;;  %208 = vst [vmem:[#allocation7 + $0x10] sm:$0xff] %v201_v16  ;;  %v203_v18 = vpop.f32.mrb[1].mxu1 }
 0x104   :  { %207 = vst [vmem:[#allocation7 + $0x8] sm:$0xff] %v132_v17  ;;  %209 = vst [vmem:[#allocation7 + $0x18] sm:$0xff] %v203_v18 }
 0x105   :  { %306 = shalt.err (!%p303_p6)
}
 0x106   :  { %s307_s10 = scalar_lea.hbm %s402_s2, 512 }
 0x107   :  { %p308_p7 = scmp.ne.s32.totalorder %s402_s2, %s307_s10  ;;  %p311_p8 = scmp.lt.u32.totalorder %s307_s10, %s402_s2 }
 0x109   :  { %p313_p9 = pnand %p311_p8, %p308_p7 }
 0x10b   :  { %316 = shalt.err (!%p313_p9)
}
 0x10c   :  { %219 = dma.vmem_to_hbm [thread:$0]  %s217_s6, 512, %s402_s2, [#allocation4]  }
 0x10d   :  { %321 = dma.done.wait [#allocation4], 512  }
 0x10e   :  { %322 = vsyncadd [#allocation4], 4294966784 }
 0x10f   :  { %223 = vsyncpa [#allocation3], 1 }
 0x110   :  { %224 = vsyncpa [#allocation6], 1 }
 0x111   :  { %225 = vsyncpa [#allocation4], 1 }

</bundles_post_ra>
